<compile_context>
chip_gen: v7x
topology: tpu7x:2x2x1
jax: 0.10.0
libtpu: 0.0.40
codegen_flags: <defaults>
</compile_context>

<pallas_src>
import jax
import jax.numpy as jnp
from jax.experimental import pallas as pl
from jax.experimental.pallas import tpu as pltpu


def _swish_kernel(x_ref, o_ref):
    x = x_ref[...]
    # Compute in f32 for stability (also keeps v5e happy: no bf16 VPU/EUP),
    # cast back to the input dtype.  Purely HBM-bound, so this is free.
    xf = x.astype(jnp.float32)
    o_ref[...] = (xf * jax.nn.sigmoid(xf)).astype(o_ref.dtype)


def swish(x: jax.Array, *, target_block_bytes: int = 2 * 1024 * 1024,
          donate: bool = False) -> jax.Array:
    """Elementwise Swish: x * sigmoid(x), matching torch semantics."""
    orig_shape = x.shape
    dtype = x.dtype
    n = x.size
    itemsize = jnp.dtype(dtype).itemsize

    # Sublane quantum depends on dtype packing: 8 (f32), 16 (bf16), 32 (int8/fp8).
    row_quantum = 8 * max(1, 4 // itemsize)

    # Pick a wide, lane-dense last dim (multiple of 128).  Prefer a width that
    # needs no padding at all; typical NCTHW movinet tensors (H*W = 256, ...)
    # always hit the no-pad path, so there is no extra HBM pass.
    lanes = None
    for cand in (4096, 2048, 1024, 512, 256, 128):
        if n % (cand * row_quantum) == 0:
            lanes = cand
            break
    if lanes is None:
        for cand in (2048, 1024, 512, 256, 128):
            if n % cand == 0:
                lanes = cand
                break
    if lanes is None:
        lanes = 128

    x_flat = x.reshape(-1)
    pad = (-n) % (lanes * row_quantum)
    if pad:
        # Rare fallback (awkward element counts only): swish(0) == 0, safe.
        x_flat = jnp.pad(x_flat, (0, pad))
    n_rows = x_flat.size // lanes
    x2d = x_flat.reshape(n_rows, lanes)

    # Block rows: target ~target_block_bytes per block, rounded to the sublane
    # quantum, never collapsing (no divisor search -> no silent 4 KiB blocks).
    tr = max(row_quantum, target_block_bytes // (lanes * itemsize))
    tr = (tr // row_quantum) * row_quantum
    tr = min(tr, n_rows)

    grid = (pl.cdiv(n_rows, tr),)  # partial last block is masked by Pallas

    out2d = pl.pallas_call(
        _swish_kernel,
        out_shape=jax.ShapeDtypeStruct((n_rows, lanes), dtype),
        grid_spec=pltpu.PrefetchScalarGridSpec(
            num_scalar_prefetch=0,
            grid=grid,
            in_specs=[pl.BlockSpec((tr, lanes), lambda i: (i, 0))],
            out_specs=pl.BlockSpec((tr, lanes), lambda i: (i, 0)),
        ),
        compiler_params=pltpu.CompilerParams(
            # Shards the grid across TensorCores on megacore chips (v7x).
            dimension_semantics=("parallel",),
        ),
        # Optional donation halves peak HBM footprint for big activations.
        input_output_aliases=({0: 0} if donate else {}),
    )(x2d)

    out_flat = out2d.reshape(-1)
    if pad:
        out_flat = out_flat[:n]
    return out_flat.reshape(orig_shape)


if __name__ == "__main__":
    key = jax.random.PRNGKey(0)
    # Small movinet-style video tensor: N=2, C=4, T=8, H=16, W=16 (NCTHW).
    x = jax.random.normal(key, (2, 4, 8, 16, 16), dtype=jnp.float32)

    y = swish(x)
    jax.block_until_ready(y)

    # Reference check in plain JAX.
    y_ref = x * jax.nn.sigmoid(x)
    assert y.shape == x.shape and y.dtype == x.dtype
    assert jnp.allclose(y, y_ref, atol=1e-6, rtol=1e-6)

    # Awkward element count exercising the (rare) padded fallback path.
    x2 = jax.random.normal(jax.random.PRNGKey(1), (3, 5, 7, 11), dtype=jnp.float32)
    y2 = swish(x2)
    jax.block_until_ready(y2)
    assert jnp.allclose(y2, x2 * jax.nn.sigmoid(x2), atol=1e-6, rtol=1e-6)

    print("KERNEL_OK")
</pallas_src>

<mosaic_0001>
module attributes {stable_mosaic.version = 11 : i64} {
  func.func @_swish_kernel(%arg0: i32, %arg1: memref<8x2048xf32, #tpu.memory_space<vmem>>, %arg2: memref<8x2048xf32, #tpu.memory_space<vmem>>) attributes {dimension_semantics = [#tpu.dimension_semantics<parallel>], iteration_bounds = array<i64: 1>, scalar_prefetch = 0 : i64, scratch_operands = 0 : i64, tpu.core_type = #tpu.core_type<tc>, window_params = [{transform_indices = @transform_0, window_bounds = array<i64: 8, 2048>}, {transform_indices = @transform_1, window_bounds = array<i64: 8, 2048>}]} {
    %c0 = arith.constant 0 : index
    %c0_0 = arith.constant 0 : index
    %0 = vector.load %arg1[%c0, %c0_0] : memref<8x2048xf32, #tpu.memory_space<vmem>>, vector<8x2048xf32>
    %1 = arith.negf %0 : vector<8x2048xf32>
    %2 = math.exp %1 : vector<8x2048xf32>
    %cst = arith.constant 1.000000e+00 : f32
    %3 = vector.broadcast %cst : f32 to vector<8x2048xf32>
    %4 = arith.addf %3, %2 : vector<8x2048xf32>
    %5 = arith.divf %3, %4 : vector<8x2048xf32>
    %6 = arith.mulf %0, %5 : vector<8x2048xf32>
    %c0_1 = arith.constant 0 : index
    %c0_2 = arith.constant 0 : index
    %7 = vector.load %arg2[%c0_1, %c0_2] : memref<8x2048xf32, #tpu.memory_space<vmem>>, vector<8x2048xf32>
    tpu.vector_store %arg2[%c0_1, %c0_2], %6 {strides = array<i32>} : memref<8x2048xf32, #tpu.memory_space<vmem>>, vector<8x2048xf32>,
    return
  }
  func.func @transform_0(%arg0: i32) -> (i32, i32) {
    %c0_i32 = arith.constant 0 : i32
    %c0_i32_0 = arith.constant 0 : i32
    return %arg0, %c0_i32 : i32, i32
  }
  func.func @transform_1(%arg0: i32) -> (i32, i32) {
    %c0_i32 = arith.constant 0 : i32
    %c0_i32_0 = arith.constant 0 : i32
    return %arg0, %c0_i32 : i32, i32
  }
}

</mosaic_0001>

<bundles_post_ra>
// kernel: tpu_custom_call.1
= control target key start
LH: loop header
LB: loop body
LE: loop exit
PB: predicated region body
PF: predicated region fallthrough
CT: control target
= control target key end

     0   :  { %6 = vsyncpa [#allocation3], 0  ;;  %s410_s0 = inlined_call_operand.hbm [shape: f32[8,2048], index: 0, kind: input, shape index: {}]   ;;  %s411_s1 = inlined_call_operand.hbm [shape: f32[8,2048], index: 1, kind: output, shape index: {}]  }
   0x1   :  { %7 = vsyncpa [#allocation4], 0  ;;  %s310_s6 = smov [#allocation2]   ;;  %s262_s10 = scalar_lea.hbm %s410_s0, 2048 }
   0x2   :  { %s14_s7 = sshll.u32 %s310_s6, 4  ;;  %p263_p0 = scmp.ne.s32.totalorder %s410_s0, %s262_s10  ;;  %s15_s7 = int_to_ptr.vmem [resolvable:$true] %s14_s7 }
   0x3   :  { %p266_p1 = scmp.lt.u32.totalorder %s262_s10, %s410_s0 }
   0x5   :  { %p268_p2 = pnand %p266_p1, %p263_p0 }
   0x7   :  { %271 = shalt.err (!%p268_p2)
}
   0x8   :  { %s272_s15 = scalar_lea.vmem %s15_s7, 2048  ;;  %p277_p4 = scmp.lt.s32.totalorder %s15_s7, %s15_s7 }
   0x9   :  { %p273_p3 = scmp.ne.s32.totalorder %s15_s7, %s272_s15  ;;  %p278_p5 = scmp.lt.s32.totalorder %s272_s15, %s272_s15 }
   0xb   :  { %p279_p6 = por %p278_p5, %p277_p4 }
   0xd   :  { %p280_p7 = pnand %p279_p6, %p273_p3 }
   0xf   :  { %283 = shalt.err (!%p280_p7)
}
  0x10   :  { %17 = dma.hbm_to_vmem [thread:$0]  %s410_s0, 2048, %s15_s7, [#allocation3]  }
  0x11   :  { %306 = dma.done.wait [#allocation3], 2048  }
  0x12   :  { %307 = vsyncadd [#allocation3], 4294965248  ;;  %v334_v0 = vld [vmem:[#allocation2] sm:$0xff]  ;;  %v336_v1 = vld [vmem:[#allocation2 + $0x8] sm:$0xff]  ;;  %s311_s0 = smov [#allocation5]  }
  0x13   :  { %v338_v2 = vld [vmem:[#allocation2 + $0x10] sm:$0xff]  ;;  %v180_v3 = vmul.f32 -1.442695, %v334_v0  ;;  %v181_v4 = vmul.f32 -1.442695, %v336_v1  ;;  %v343_v6 = vld [vmem:[#allocation2 + $0x18] sm:$0xff] }
  0x14   :  { %v182_v5 = vmul.f32 -1.442695, %v338_v2  ;;  %v345_v7 = vld [vmem:[#allocation2 + $0x20] sm:$0xff]  ;;  %v347_v8 = vld [vmem:[#allocation2 + $0x28] sm:$0xff]  ;;  %v183_v9 = vmul.f32 -1.442695, %v343_v6 }
  0x15   :  { %198 = vpow2.f32 %v180_v3  ;;  %v184_v10 = vmul.f32 -1.442695, %v345_v7  ;;  %v185_v11 = vmul.f32 -1.442695, %v347_v8  ;;  %v352_v12 = vld [vmem:[#allocation2 + $0x30] sm:$0xff]  ;;  %v354_v13 = vld [vmem:[#allocation2 + $0x38] sm:$0xff] }
  0x16   :  { %200 = vpow2.f32 %v181_v4  ;;  %v356_v14 = vld [vmem:[#allocation2 + $0x40] sm:$0xff]  ;;  %v186_v15 = vmul.f32 -1.442695, %v352_v12  ;;  %v187_v16 = vmul.f32 -1.442695, %v354_v13  ;;  %v360_v17 = vld [vmem:[#allocation2 + $0x48] sm:$0xff] }
  0x17   :  { %202 = vpow2.f32 %v182_v5  ;;  %v362_v18 = vld [vmem:[#allocation2 + $0x50] sm:$0xff]  ;;  %v188_v19 = vmul.f32 -1.442695, %v356_v14  ;;  %v365_v20 = vld [vmem:[#allocation2 + $0x58] sm:$0xff]  ;;  %v189_v21 = vmul.f32 -1.442695, %v360_v17 }
  0x18   :  { %204 = vpow2.f32 %v183_v9  ;;  %v368_v22 = vld [vmem:[#allocation2 + $0x60] sm:$0xff]  ;;  %v190_v23 = vmul.f32 -1.442695, %v362_v18  ;;  %v191_v24 = vmul.f32 -1.442695, %v365_v20  ;;  %v373_v45 = vld [vmem:[#allocation2 + $0x68] sm:$0xff] }
  0x19   :  { %206 = vpow2.f32 %v184_v10  ;;  %v192_v25 = vmul.f32 -1.442695, %v368_v22  ;;  %v375_v48 = vld [vmem:[#allocation2 + $0x70] sm:$0xff]  ;;  %v377_v51 = vld [vmem:[#allocation2 + $0x78] sm:$0xff]  ;;  %v193_v54 = vmul.f32 -1.442695, %v373_v45 }
  0x1a   :  { %208 = vpow2.f32 %v185_v11  ;;  %v194_v57 = vmul.f32 -1.442695, %v375_v48  ;;  %v195_v60 = vmul.f32 -1.442695, %v377_v51  ;;  %s171_s18 = sshll.u32 %s311_s0, 4  ;;  %s172_s18 = int_to_ptr.vmem [resolvable:$true] %s171_s18 }
  0x1b   :  { %210 = vpow2.f32 %v186_v15  ;;  %s284_s19 = scalar_lea.vmem %s172_s18, 2048  ;;  %p289_p9 = scmp.lt.s32.totalorder %s172_s18, %s172_s18 }
  0x1c   :  { %212 = vpow2.f32 %v187_v16  ;;  %p285_p8 = scmp.ne.s32.totalorder %s172_s18, %s284_s19  ;;  %p290_p10 = scmp.lt.s32.totalorder %s284_s19, %s284_s19 }
  0x1d   :  { %214 = vpow2.f32 %v188_v19 }
  0x1e   :  { %216 = vpow2.f32 %v189_v21  ;;  %p291_p11 = por %p290_p10, %p289_p9 }
  0x1f   :  { %v199_v26 = vpop.eup %198  ;;  %218 = vpow2.f32 %v190_v23 }
  0x20   :  { %v201_v27 = vpop.eup %200  ;;  %v85_v28 = vadd.f32 1.0, %v199_v26  ;;  %220 = vpow2.f32 %v191_v24  ;;  %p292_p12 = pnand %p291_p11, %p285_p8 }
  0x21   :  { %v203_v29 = vpop.eup %202  ;;  %v86_v30 = vadd.f32 1.0, %v201_v27  ;;  %222 = vpow2.f32 %v192_v25 }
  0x22   :  { %v205_v31 = vpop.eup %204  ;;  %224 = vrcp.f32 %v85_v28  ;;  %v87_v32 = vadd.f32 1.0, %v203_v29 }
  0x23   :  { %v207_v33 = vpop.eup %206  ;;  %226 = vrcp.f32 %v86_v30  ;;  %v88_v34 = vadd.f32 1.0, %v205_v31 }
  0x24   :  { %v209_v35 = vpop.eup %208  ;;  %228 = vrcp.f32 %v87_v32  ;;  %v89_v36 = vadd.f32 1.0, %v207_v33 }
  0x25   :  { %v211_v37 = vpop.eup %210  ;;  %230 = vrcp.f32 %v88_v34  ;;  %v90_v38 = vadd.f32 1.0, %v209_v35 }
  0x26   :  { %v213_v39 = vpop.eup %212  ;;  %232 = vrcp.f32 %v89_v36  ;;  %v91_v40 = vadd.f32 1.0, %v211_v37 }
  0x27   :  { %v215_v41 = vpop.eup %214  ;;  %234 = vrcp.f32 %v90_v38  ;;  %v92_v42 = vadd.f32 1.0, %v213_v39 }
  0x28   :  { %v217_v43 = vpop.eup %216  ;;  %236 = vrcp.f32 %v91_v40  ;;  %v93_v44 = vadd.f32 1.0, %v215_v41 }
  0x29   :  { %v219_v46 = vpop.eup %218  ;;  %238 = vrcp.f32 %v92_v42  ;;  %v94_v47 = vadd.f32 1.0, %v217_v43 }
  0x2a   :  { %v221_v49 = vpop.eup %220  ;;  %240 = vrcp.f32 %v93_v44  ;;  %v95_v50 = vadd.f32 1.0, %v219_v46 }
  0x2b   :  { %v223_v52 = vpop.eup %222  ;;  %242 = vrcp.f32 %v94_v47  ;;  %v96_v53 = vadd.f32 1.0, %v221_v49 }
  0x2c   :  { %v225_v55 = vpop.eup %224  ;;  %244 = vrcp.f32 %v95_v50  ;;  %v97_v56 = vadd.f32 1.0, %v223_v52 }
  0x2d   :  { %v227_v58 = vpop.eup %226  ;;  %v133_v59 = vmul.f32 %v225_v55, %v334_v0  ;;  %246 = vrcp.f32 %v96_v53 }
  0x2e   :  { %v229_v61 = vpop.eup %228  ;;  %v134_v62 = vmul.f32 %v227_v58, %v336_v1  ;;  %248 = vrcp.f32 %v97_v56 }
  0x2f   :  { %v231_v63 = vpop.eup %230  ;;  %149 = vst [vmem:[#allocation5] sm:$0xff] %v133_v59  ;;  %v135_v3 = vmul.f32 %v229_v61, %v338_v2  ;;  %250 = vpow2.f32 %v193_v54 }
  0x30   :  { %v233_v4 = vpop.eup %232  ;;  %150 = vst [vmem:[#allocation5 + $0x8] sm:$0xff] %v134_v62  ;;  %v136_v5 = vmul.f32 %v231_v63, %v343_v6  ;;  %252 = vpow2.f32 %v194_v57 }
  0x31   :  { %v235_v9 = vpop.eup %234  ;;  %151 = vst [vmem:[#allocation5 + $0x10] sm:$0xff] %v135_v3  ;;  %v137_v0 = vmul.f32 %v233_v4, %v345_v7  ;;  %254 = vpow2.f32 %v195_v60 }
  0x32   :  { %v237_v10 = vpop.eup %236  ;;  %152 = vst [vmem:[#allocation5 + $0x18] sm:$0xff] %v136_v5  ;;  %v138_v1 = vmul.f32 %v235_v9, %v347_v8 }
  0x33   :  { %v239_v11 = vpop.eup %238  ;;  %153 = vst [vmem:[#allocation5 + $0x20] sm:$0xff] %v137_v0  ;;  %v139_v15 = vmul.f32 %v237_v10, %v352_v12 }
  0x34   :  { %v241_v2 = vpop.eup %240  ;;  %154 = vst [vmem:[#allocation5 + $0x28] sm:$0xff] %v138_v1  ;;  %v140_v16 = vmul.f32 %v239_v11, %v354_v13 }
  0x35   :  { %v243_v19 = vpop.eup %242  ;;  %155 = vst [vmem:[#allocation5 + $0x30] sm:$0xff] %v139_v15  ;;  %v141_v6 = vmul.f32 %v241_v2, %v356_v14 }
  0x36   :  { %v245_v21 = vpop.eup %244  ;;  %156 = vst [vmem:[#allocation5 + $0x38] sm:$0xff] %v140_v16  ;;  %v142_v7 = vmul.f32 %v243_v19, %v360_v17 }
  0x37   :  { %v247_v23 = vpop.eup %246  ;;  %157 = vst [vmem:[#allocation5 + $0x40] sm:$0xff] %v141_v6  ;;  %v143_v8 = vmul.f32 %v245_v21, %v362_v18 }
  0x38   :  { %v249_v24 = vpop.eup %248  ;;  %158 = vst [vmem:[#allocation5 + $0x48] sm:$0xff] %v142_v7  ;;  %v144_v12 = vmul.f32 %v247_v23, %v365_v20 }
  0x39   :  { %v251_v25 = vpop.eup %250  ;;  %159 = vst [vmem:[#allocation5 + $0x50] sm:$0xff] %v143_v8  ;;  %v145_v13 = vmul.f32 %v249_v24, %v368_v22 }
  0x3a   :  { %v253_v26 = vpop.eup %252  ;;  %160 = vst [vmem:[#allocation5 + $0x58] sm:$0xff] %v144_v12  ;;  %v98_v27 = vadd.f32 1.0, %v251_v25 }
  0x3b   :  { %v255_v14 = vpop.eup %254  ;;  %161 = vst [vmem:[#allocation5 + $0x60] sm:$0xff] %v145_v13  ;;  %v99_v28 = vadd.f32 1.0, %v253_v26 }
  0x3c   :  { %256 = vrcp.f32 %v98_v27  ;;  %v100_v17 = vadd.f32 1.0, %v255_v14 }
  0x3d   :  { %258 = vrcp.f32 %v99_v28 }
  0x3e   :  { %260 = vrcp.f32 %v100_v17 }
  0x46   :  { %v257_v29 = vpop.eup %256 }
  0x47   :  { %v259_v18 = vpop.eup %258  ;;  %v146_v20 = vmul.f32 %v257_v29, %v373_v45 }
  0x48   :  { %v261_v30 = vpop.eup %260  ;;  %v147_v31 = vmul.f32 %v259_v18, %v375_v48 }
  0x49   :  { %162 = vst [vmem:[#allocation5 + $0x68] sm:$0xff] %v146_v20  ;;  %v148_v22 = vmul.f32 %v261_v30, %v377_v51 }
  0x4a   :  { %163 = vst [vmem:[#allocation5 + $0x70] sm:$0xff] %v147_v31 }
  0x4b   :  { %164 = vst [vmem:[#allocation5 + $0x78] sm:$0xff] %v148_v22 }
  0x4c   :  { %295 = shalt.err (!%p292_p12)
}
  0x4d   :  { %s296_s22 = scalar_lea.hbm %s411_s1, 2048 }
  0x4e   :  { %p297_p13 = scmp.ne.s32.totalorder %s411_s1, %s296_s22  ;;  %p300_p0 = scmp.lt.u32.totalorder %s296_s22, %s411_s1 }
  0x50   :  { %p302_p1 = pnand %p300_p0, %p297_p13 }
  0x52   :  { %305 = shalt.err (!%p302_p1)
}
  0x53   :  { %174 = dma.vmem_to_hbm [thread:$0]  %s172_s18, 2048, %s411_s1, [#allocation4]  }
  0x54   :  { %308 = dma.done.wait [#allocation4], 2048  }
  0x55   :  { %309 = vsyncadd [#allocation4], 4294965248 }
  0x56   :  { %178 = vsyncpa [#allocation3], 1 }
  0x57   :  { %179 = vsyncpa [#allocation4], 1 }

</bundles_post_ra>
